<compile_context>
chip_gen: v5e
topology: v5e:2x2
jax: 0.10.0
libtpu: 0.0.40
codegen_flags: <defaults>
</compile_context>

<pallas_src>
import functools

import jax
import jax.numpy as jnp
from jax.experimental import pallas as pl
from jax.experimental.pallas import tpu as pltpu


def _round_up(x, m):
    return (x + m - 1) // m * m


# Conservative VMEM budget for the double-buffered input blocks: stays well
# under v5e's 16 MiB scoped default (v6e/v7x default to 32 MiB), so no
# vmem_limit_bytes override is needed on any generation.
_VMEM_BUDGET_BYTES = 10 * 1024 * 1024
_MAX_LOGITS_BLOCK_BYTES = 4 * 1024 * 1024   # keep per-step DMA in ~1-4 MiB


def _pick_tile_rows(n, b, itemsize, pack):
    """Pick the row tile so per-step DMA is ~1-4 MiB and VMEM stays bounded."""
    b_pad = _round_up(b, 128)
    # Per-row VMEM bytes, double-buffered: logits block (lane-padded) plus the
    # lane-padded (tn, 1) int32 target block.
    per_row_db = 2 * (itemsize * b_pad + 4 * 128)
    tn = max(pack, (_VMEM_BUDGET_BYTES // per_row_db) // pack * pack)
    cap = max(pack, (_MAX_LOGITS_BLOCK_BYTES // (itemsize * b_pad)) // pack * pack)
    tn = min(tn, cap)
    tn = min(tn, _round_up(n, pack))
    return tn


def _focal_loss_kernel(logits_ref, target_ref, out_ref, *, gamma, n_total,
                       needs_mask):
    i = pl.program_id(0)

    x = logits_ref[...].astype(jnp.float32)          # (TILE_N, B)
    t = target_ref[...]                              # (TILE_N, 1) int32
    tn, b = x.shape

    # Numerically stable log-softmax pieces along the bin (lane) axis.
    m = jnp.max(x, axis=-1, keepdims=True)
    z = x - m
    lse = jnp.log(jnp.sum(jnp.exp(z), axis=-1, keepdims=True))   # (TILE_N, 1)

    # gather(1, target) fused with -lse as a single-select masked row-sum; the
    # full (TILE_N, B) log-softmax array is never materialized.
    cols = jax.lax.broadcasted_iota(jnp.int32, (tn, b), 1)
    logpt = jnp.sum(jnp.where(cols == t, z, 0.0), axis=-1, keepdims=True) - lse

    pt = jnp.exp(logpt)

    g = float(gamma)
    if g == 0.0:
        loss = -logpt                                            # skip weight
    elif g.is_integer() and g >= 0.0:
        loss = -jax.lax.integer_pow(1.0 - pt, int(g)) * logpt    # VPU muls
    else:
        loss = -((1.0 - pt) ** g) * logpt                        # EUP exp/log

    def _store(v):
        # Lane-dense (1, 8, 128) partial-sum block; the wrapper reads [:,0,0].
        out_ref[...] = jnp.full(out_ref.shape, jnp.sum(v), dtype=jnp.float32)

    if needs_mask:
        is_last = i == pl.num_programs(0) - 1

        @pl.when(is_last)
        def _tail():
            # Select-based mask: NaN/Inf in the unspecified tail rows of the
            # partial last block cannot leak into the sum.
            rows = i * tn + jax.lax.broadcasted_iota(jnp.int32, (tn, 1), 0)
            _store(jnp.where(rows < n_total, loss, 0.0))

        @pl.when(jnp.logical_not(is_last))
        def _body():
            _store(loss)
    else:
        _store(loss)


def focal_loss(logits, target, *, gamma=0.0, size_average=True, tile_n=None):
    """logits: (N, B) float, target: (N,) int -> scalar float32."""
    n, b = logits.shape
    itemsize = jnp.dtype(logits.dtype).itemsize
    pack = {4: 8, 2: 16, 1: 32}.get(itemsize, 8)   # sublane pack per dtype

    if tile_n is None:
        tn = _pick_tile_rows(n, b, itemsize, pack)
    else:
        tn = min(_round_up(int(tile_n), pack), _round_up(n, pack))

    num_tiles = pl.cdiv(n, tn)
    target2d = target.reshape(n, 1).astype(jnp.int32)

    kernel = functools.partial(
        _focal_loss_kernel,
        gamma=float(gamma),
        n_total=n,
        needs_mask=(n % tn != 0),
    )

    partials = pl.pallas_call(
        kernel,
        out_shape=jax.ShapeDtypeStruct((num_tiles, 8, 128), jnp.float32),
        grid=(num_tiles,),
        in_specs=[
            pl.BlockSpec((tn, b), lambda i: (i, 0)),
            pl.BlockSpec((tn, 1), lambda i: (i, 0)),
        ],
        out_specs=pl.BlockSpec((1, 8, 128), lambda i: (i, 0, 0)),
        compiler_params=pltpu.CompilerParams(
            # Each step owns its own output block -> no carried state -> the
            # row axis is parallel (v7x dual-TensorCore sharding; neutral on
            # single-TC v5e/v6e).
            dimension_semantics=("parallel",),
        ),
    )(logits, target2d)

    total = jnp.sum(partials[:, 0, 0])
    if size_average:
        return total / jnp.float32(n)
    return total


def _focal_loss_ref(logits, target, *, gamma=0.0, size_average=True):
    logp = jax.nn.log_softmax(logits.astype(jnp.float32), axis=-1)
    logpt = jnp.take_along_axis(logp, target.reshape(-1, 1), axis=1).reshape(-1)
    pt = jnp.exp(logpt)
    loss = -1.0 * (1.0 - pt) ** gamma * logpt
    return jnp.mean(loss) if size_average else jnp.sum(loss)


if __name__ == "__main__":
    N, B = 40, 32
    key = jax.random.PRNGKey(0)
    k1, k2 = jax.random.split(key)
    logits = jax.random.normal(k1, (N, B), dtype=jnp.float32)
    target = jax.random.randint(k2, (N,), 0, B, dtype=jnp.int32)

    # gamma=2 (integer fast path), mean reduction, small tile to exercise the
    # multi-step parallel grid + last-step tail masking (40 rows -> 3 tiles
    # of 16, last tile half out-of-bounds).
    out = focal_loss(logits, target, gamma=2.0, size_average=True, tile_n=16)
    out = jax.block_until_ready(out)
    ref = _focal_loss_ref(logits, target, gamma=2.0, size_average=True)
    assert jnp.allclose(out, ref, rtol=1e-5, atol=1e-6), (out, ref)

    # gamma=0 (weight skipped), sum reduction, auto (bytes-based) tile:
    # single partial tile with in-kernel tail masking, no wrapper-side pad.
    out2 = focal_loss(logits, target, gamma=0.0, size_average=False)
    out2 = jax.block_until_ready(out2)
    ref2 = _focal_loss_ref(logits, target, gamma=0.0, size_average=False)
    assert jnp.allclose(out2, ref2, rtol=1e-5, atol=1e-5), (out2, ref2)

    # Non-integer gamma (float pow path), exact-divide grid (no tail mask).
    out3 = focal_loss(logits, target, gamma=1.5, size_average=True, tile_n=8)
    out3 = jax.block_until_ready(out3)
    ref3 = _focal_loss_ref(logits, target, gamma=1.5, size_average=True)
    assert jnp.allclose(out3, ref3, rtol=1e-5, atol=1e-6), (out3, ref3)

    print("KERNEL_OK")
</pallas_src>

<mosaic_0001>
module attributes {stable_mosaic.version = 11 : i64} {
  func.func @_focal_loss_kernel(%arg0: i32, %arg1: memref<16x32xf32, #tpu.memory_space<vmem>>, %arg2: memref<16x1xi32, #tpu.memory_space<vmem>>, %arg3: memref<1x8x128xf32, #tpu.memory_space<vmem>>) attributes {dimension_semantics = [#tpu.dimension_semantics<parallel>], iteration_bounds = array<i64: 3>, scalar_prefetch = 0 : i64, scratch_operands = 0 : i64, tpu.core_type = #tpu.core_type<tc>, window_params = [{transform_indices = @transform_0, window_bounds = array<i64: 16, 32>}, {transform_indices = @transform_1, window_bounds = array<i64: 16, 1>}, {transform_indices = @transform_2, window_bounds = array<i64: 1, 8, 128>}]} {
    %c0 = arith.constant 0 : index
    %c0_0 = arith.constant 0 : index
    %0 = vector.load %arg1[%c0, %c0_0] : memref<16x32xf32, #tpu.memory_space<vmem>>, vector<16x32xf32>
    %c0_1 = arith.constant 0 : index
    %c0_2 = arith.constant 0 : index
    %1 = vector.load %arg2[%c0_1, %c0_2] : memref<16x1xi32, #tpu.memory_space<vmem>>, vector<16x1xi32>
    %cst = arith.constant dense<0xFF800000> : vector<16xf32>
    %2 = vector.multi_reduction <maximumf>, %0, %cst [1] : vector<16x32xf32> to vector<16xf32>
    %3 = vector.shape_cast %2 : vector<16xf32> to vector<16x1xf32>
    %4 = vector.broadcast %3 : vector<16x1xf32> to vector<16x32xf32>
    %5 = arith.subf %0, %4 : vector<16x32xf32>
    %6 = math.exp %5 : vector<16x32xf32>
    %cst_3 = arith.constant dense<0.000000e+00> : vector<16xf32>
    %7 = vector.multi_reduction <add>, %6, %cst_3 [1] : vector<16x32xf32> to vector<16xf32>
    %8 = vector.shape_cast %7 : vector<16xf32> to vector<16x1xf32>
    %9 = math.log %8 : vector<16x1xf32>
    %10 = tpu.iota {dimensions = array<i32: 1>} : vector<16x32xi32>
    %11 = vector.broadcast %1 : vector<16x1xi32> to vector<16x32xi32>
    %12 = arith.cmpi eq, %10, %11 : vector<16x32xi32>
    %cst_4 = arith.constant 0.000000e+00 : f32
    %13 = vector.broadcast %cst_4 : f32 to vector<16x32xf32>
    %14 = arith.select %12, %5, %13 : vector<16x32xi1>, vector<16x32xf32>
    %cst_5 = arith.constant dense<0.000000e+00> : vector<16xf32>
    %15 = vector.multi_reduction <add>, %14, %cst_5 [1] : vector<16x32xf32> to vector<16xf32>
    %16 = vector.shape_cast %15 : vector<16xf32> to vector<16x1xf32>
    %17 = arith.subf %16, %9 : vector<16x1xf32>
    %18 = math.exp %17 : vector<16x1xf32>
    %cst_6 = arith.constant 1.000000e+00 : f32
    %19 = vector.broadcast %cst_6 : f32 to vector<16x1xf32>
    %20 = arith.subf %19, %18 : vector<16x1xf32>
    %21 = arith.mulf %20, %20 : vector<16x1xf32>
    %cst_7 = arith.constant 0.000000e+00 : f32
    %22 = vector.broadcast %cst_7 : f32 to vector<16x1xf32>
    %23 = arith.subf %22, %21 : vector<16x1xf32>
    %24 = arith.mulf %23, %17 : vector<16x1xf32>
    %c2_i32 = arith.constant 2 : i32
    %25 = arith.cmpi eq, %arg0, %c2_i32 : i32
    %26 = arith.extui %25 : i1 to i32
    %c0_i32 = arith.constant 0 : i32
    %27 = arith.cmpi ne, %26, %c0_i32 : i32
    scf.if %27 {
      %c16_i32 = arith.constant 16 : i32
      %31 = arith.muli %arg0, %c16_i32 : i32
      %32 = tpu.iota {dimensions = array<i32: 0>} : vector<16x1xi32>
      %33 = vector.broadcast %31 : i32 to vector<16x1xi32>
      %34 = arith.addi %33, %32 : vector<16x1xi32>
      %c40_i32 = arith.constant 40 : i32
      %35 = vector.broadcast %c40_i32 : i32 to vector<16x1xi32>
      %36 = arith.cmpi slt, %34, %35 : vector<16x1xi32>
      %cst_9 = arith.constant 0.000000e+00 : f32
      %37 = vector.broadcast %cst_9 : f32 to vector<16x1xf32>
      %38 = arith.select %36, %24, %37 : vector<16x1xi1>, vector<16x1xf32>
      %39 = vector.shape_cast %38 : vector<16x1xf32> to vector<1x16x1xf32>
      %cst_10 = arith.constant dense<0.000000e+00> : vector<1xf32>
      %40 = vector.multi_reduction <add>, %39, %cst_10 [1, 2] : vector<1x16x1xf32> to vector<1xf32>
      %41 = vector.shape_cast %40 : vector<1xf32> to vector<1x1x1xf32>
      %42 = vector.extract %41[0, 0, 0] : f32 from vector<1x1x1xf32>
      %43 = vector.broadcast %42 : f32 to vector<1x8x128xf32>
      %c0_11 = arith.constant 0 : index
      %c0_12 = arith.constant 0 : index
      %c0_13 = arith.constant 0 : index
      %44 = vector.load %arg3[%c0_11, %c0_12, %c0_13] : memref<1x8x128xf32, #tpu.memory_space<vmem>>, vector<1x8x128xf32>
      tpu.vector_store %arg3[%c0_11, %c0_12, %c0_13], %43 {strides = array<i32>} : memref<1x8x128xf32, #tpu.memory_space<vmem>>, vector<1x8x128xf32>,
    } else {
    }
    %true = arith.constant true
    %28 = arith.xori %25, %true : i1
    %29 = arith.extui %28 : i1 to i32
    %c0_i32_8 = arith.constant 0 : i32
    %30 = arith.cmpi ne, %29, %c0_i32_8 : i32
    scf.if %30 {
      %31 = vector.shape_cast %24 : vector<16x1xf32> to vector<1x16x1xf32>
      %cst_9 = arith.constant dense<0.000000e+00> : vector<1xf32>
      %32 = vector.multi_reduction <add>, %31, %cst_9 [1, 2] : vector<1x16x1xf32> to vector<1xf32>
      %33 = vector.shape_cast %32 : vector<1xf32> to vector<1x1x1xf32>
      %34 = vector.extract %33[0, 0, 0] : f32 from vector<1x1x1xf32>
      %35 = vector.broadcast %34 : f32 to vector<1x8x128xf32>
      %c0_10 = arith.constant 0 : index
      %c0_11 = arith.constant 0 : index
      %c0_12 = arith.constant 0 : index
      %36 = vector.load %arg3[%c0_10, %c0_11, %c0_12] : memref<1x8x128xf32, #tpu.memory_space<vmem>>, vector<1x8x128xf32>
      tpu.vector_store %arg3[%c0_10, %c0_11, %c0_12], %35 {strides = array<i32>} : memref<1x8x128xf32, #tpu.memory_space<vmem>>, vector<1x8x128xf32>,
    } else {
    }
    return
  }
  func.func @transform_0(%arg0: i32) -> (i32, i32) {
    %c0_i32 = arith.constant 0 : i32
    %c0_i32_0 = arith.constant 0 : i32
    return %arg0, %c0_i32 : i32, i32
  }
  func.func @transform_1(%arg0: i32) -> (i32, i32) {
    %c0_i32 = arith.constant 0 : i32
    %c0_i32_0 = arith.constant 0 : i32
    return %arg0, %c0_i32 : i32, i32
  }
  func.func @transform_2(%arg0: i32) -> (i32, i32, i32) {
    %c0_i32 = arith.constant 0 : i32
    %c0_i32_0 = arith.constant 0 : i32
    %c0_i32_1 = arith.constant 0 : i32
    return %arg0, %c0_i32, %c0_i32_0 : i32, i32, i32
  }
}

</mosaic_0001>

<bundles_post_ra>
// kernel: tpu_custom_call.1
= control target key start
LH: loop header
LB: loop body
LE: loop exit
PB: predicated region body
PF: predicated region fallthrough
CT: control target
= control target key end

     0   :  { %7 = vsyncpa [#allocation3], 0  ;;  %s663_s0 = inlined_call_operand.vmem [shape: f32[40,32], index: 0, kind: input, shape index: {}]   ;;  %s664_s1 = inlined_call_operand.vmem [shape: s32[40,1], index: 1, kind: input, shape index: {}]   ;;  %s665_s2 = inlined_call_operand.hbm [shape: f32[3,8,128], index: 2, kind: output, shape index: {}]  }
   0x1   :  { %9 = vsyncpa [#allocation3 + $0x1], 0  ;;  %s555_s9 = smov 0   ;;  %s557_s10 = smov 0  }
   0x2   :  { %s559_s11 = smov 0   ;;  %s561_s12 = smov 0  }
   0x3 LB: > { %s576_s13 = sadd.s32 4294967295, %s537_s12   ;;  %s401_s14 = sadd.s32 4294967294, %s537_s12   ;;  %s537_s12 = sphi %s561_s12, %s671_s12   ;;  %s533_s11 = sphi %s559_s11, %s670_s11   ;;  %s529_s10 = sphi %s557_s10, %s669_s10   ;;  %s525_s9 = sphi %s555_s9, %s668_s9  }
   0x4   : > { %s580_s15 = sadd.s32 1, %s537_s12   ;;  %s74_s16 = sadd.s32 1, %s533_s11 }
   0x5   : > { %s71_s17 = ssub.s32 %s537_s12, %s580_s15  ;;  %p84_p0 = scmp.ne.s32.totalorder %s533_s11, %s529_s10 }
   0x6   : > { %p72_p1 = scmp.eq.s32.totalorder %s71_s17, 0  ;;  %p85_p2 = scmp.eq.s32.totalorder %s576_s13, 2 }
   0x7   : > { %p90_p3 = scmp.ne.s32.totalorder %s529_s10, %s525_s9  ;;  %p91_p4 = scmp.eq.s32.totalorder %s401_s14, 2 }
   0x8   : > { %s591_s18 = scalar_select %p72_p1, %s533_s11, %s74_s16  }
   0x9   : > { %p595_p5 = por %p85_p2, %p84_p0  ;;  %p599_p6 = por %p91_p4, %p90_p3 }
   0xa   : > { %p404_p7 = scmp.ge.s32.totalorder %s537_s12, 1  ;;  %p143_p8 = scmp.lt.s32.totalorder %s537_s12, 4 }
   0xc   : > { %p144_p9 = pnand %p404_p7, %p143_p8 }
   0xd   : > { %s406_s21 = sshll.u32 (!%p144_p9), %s576_s13, 1  ;;  %s175_s29 = sand.u32 (!%p144_p9), 1, %s529_s10  }
   0xe   : > { %147 = sbr.rel (%p144_p9) target bundleno = 698 (0x2ba), region = 28  ;;  %p183_p10 = scmp.lt.s32.totalorder (!%p144_p9), %s406_s21, 4 }
   0xf   : > { %s405_s30 = sshll.u32 (!%p144_p9), %s175_s29, 3  ;;  %p410_p11 = scmp.ne.s32.totalorder (!%p144_p9), %s576_s13, 2 }
  0x10   : > { %s621_s3 = scalar_lea.vmem (!%p144_p9), [#allocation2], %s405_s30 }
  0x13   : > { %v539_v0 = vmov 0   ;;  %s673_s21 = smov (!%p183_p10, %s406_s21), 4  ;;  %vm210_vm0 = vcmask 261120   ;;  %v233_v7 = vlaneseq  ;;  %s411_s4 = sshll.u32 (!%p410_p11), %s576_s13, 4 }
  0x14   : > { %461 = vset.pattern.permute.xlu1 %v539_v0  ;;  %462 = vset.pattern.permute.xlu0 %v539_v0  ;;  %s407_s22 = sshll.u32 %s673_s21, 3 }
  0x15   : > { %s186_s25 = scalar_lea.vmem %s663_s0, %s407_s22  ;;  %s200_s28 = scalar_lea.vmem %s664_s1, %s407_s22  ;;  %v234_v8 = vand.u32 127, %v233_v7 }
  0x16   : > { %v206_v1 = vld [vmem:[%s186_s25] sm:$0xff]  ;;  %v207_v4 = vld [vmem:[%s186_s25 + $0x8] sm:$0xff] }
  0x17   : > { %v208_v2 = vld [vmem:[%s200_s28] sm:$0xff]  ;;  %v211_v3 = vsel %vm210_vm0, %v206_v1, -inf  ;;  %v209_v5 = vld [vmem:[%s200_s28 + $0x8] sm:$0xff]  ;;  %v214_v6 = vsel %vm210_vm0, %v207_v4, -inf }
  0x18   : > { %236 = vperm.xlu1 %461, %v208_v2   ;;  %212 = vmax.xlane.f32.xlu0 %v211_v3 }
  0x20   : > { %239 = vperm.xlu1 %461, %v209_v5   ;;  %215 = vmax.xlane.f32.xlu0 %v214_v6 }
  0x8a   : > { %v237_v9 = vpop.permute.xlu1 %236 }
  0x8b   : > { %v213_v10 = vpop.xlane.xlu0 %212  ;;  %vm241_vm1 = vcmp.eq.s32.totalorder %v234_v8, %v237_v9 }
  0x8c   : > { %v217_v11 = vsub.f32 %v206_v1, %v213_v10 }
  0x8e   : > { %v219_v12 = vmul.f32 1.442695, %v217_v11  ;;  %v243_v13 = vsel %vm241_vm1, %v217_v11, 0.0 }
  0x8f   : > { %v245_v14 = vsel %vm210_vm0, %v243_v13, 0.0 }
  0x90   : > { %463 = vpow2.f32 %v219_v12  ;;  %246 = vadd.xlane.f32.xlu0 %v245_v14 }
  0x92   : > { %v240_v15 = vpop.permute.xlu1 %239 }
  0x93   : > { %v216_v16 = vpop.xlane.xlu0 %215  ;;  %vm242_vm2 = vcmp.eq.s32.totalorder %v234_v8, %v240_v15 }
  0x94   : > { %v218_v17 = vsub.f32 %v207_v4, %v216_v16 }
  0x96   : > { %v464_v18 = vpop.eup %463  ;;  %v221_v19 = vmul.f32 1.442695, %v218_v17  ;;  %v244_v20 = vsel %vm242_vm2, %v218_v17, 0.0 }
  0x97   : > { %v223_v21 = vsel %vm210_vm0, %v464_v18, 0.0  ;;  %v248_v22 = vsel %vm210_vm0, %v244_v20, 0.0 }
  0x98   : > { %465 = vpow2.f32 %v221_v19  ;;  %224 = vadd.xlane.f32.xlu2 %v223_v21  ;;  %249 = vadd.xlane.f32.xlu1 %v248_v22 }
  0x9e   : > { %v466_v23 = vpop.eup %465 }
  0x9f   : > { %v226_v24 = vsel %vm210_vm0, %v466_v23, 0.0 }
  0xa0   : > { %227 = vadd.xlane.f32.xlu2 %v226_v24 }
 0x103   : > { %v247_v29 = vpop.xlane.xlu0 %246 }
 0x10b   : > { %v225_v25 = vpop.xlane.xlu2 %224  ;;  %v250_v34 = vpop.xlane.xlu1 %249 }
 0x10c   : > { %467 = vlog2.f32 %v225_v25 }
 0x112   : > { %v468_v26 = vpop.eup %467 }
 0x113   : > { %v230_v27 = vmul.f32 0.6931472, %v468_v26  ;;  %v228_v28 = vpop.xlane.xlu2 %227 }
 0x114   : > { %469 = vlog2.f32 %v228_v28 }
 0x115   : > { %v251_v30 = vsub.f32 %v247_v29, %v230_v27 }
 0x117   : > { %v253_v31 = vmul.f32 1.442695, %v251_v30 }
 0x119   : > { %471 = vpow2.f32 %v253_v31 }
 0x11a   : > { %v470_v32 = vpop.eup %469 }
 0x11b   : > { %v232_v33 = vmul.f32 0.6931472, %v470_v32 }
 0x11d   : > { %v252_v35 = vsub.f32 %v250_v34, %v232_v33 }
 0x11f   : > { %v472_v36 = vpop.eup %471  ;;  %v255_v37 = vmul.f32 1.442695, %v252_v35 }
 0x120   : > { %v257_v38 = vsub.f32 1.0, %v472_v36 }
 0x121   : > { %473 = vpow2.f32 %v255_v37 }
 0x122   : > { %v259_v39 = vmul.f32 %v257_v38, %v257_v38 }
 0x124   : > { %v261_v40 = vsub.f32 0.0, %v259_v39 }
 0x126   : > { %v263_v41 = vmul.f32 %v261_v40, %v251_v30 }
 0x127   : > { %v474_v42 = vpop.eup %473 }
 0x128   : > { %v258_v43 = vsub.f32 1.0, %v474_v42 }
 0x12a   : > { %v260_v44 = vmul.f32 %v258_v43, %v258_v43  ;;  %268 = sbr.rel (%p410_p11) target bundleno = 494 (0x1ee), region = 32 }
 0x12c   : > { %v262_v45 = vsub.f32 0.0, %v260_v44 }
 0x12e   : > { %v264_v46 = vmul.f32 %v262_v45, %v252_v35 }
 0x12f   : > { %v271_v47 = vshrl.u32 %v233_v7, 7  ;;  %v273_v48 = vstv %s411_s4  ;;  %vm280_vm3 = vcmask 7168  }
 0x131   : > { %v272_v49 = vadd.s32 8, %v271_v47  ;;  %v274_v50 = vadd.s32 %v273_v48, %v271_v47 }
 0x133   : > { %v275_v51 = vadd.s32 %v273_v48, %v272_v49  ;;  %vm276_vm4 = vcmp.lt.s32.totalorder %v274_v50, 40 }
 0x134   : > { %v278_v52 = vsel %vm276_vm4, %v263_v41, 0.0 }
 0x135   : > { %vm277_vm5 = vcmp.lt.s32.totalorder %v275_v51, 40  ;;  %v281_v53 = vsel %vm280_vm3, %v278_v52, 0.0 }
 0x136   : > { %v279_v54 = vsel %vm277_vm5, %v264_v46, 0.0 }
 0x137   : > { %v282_v55 = vsel %vm280_vm3, %v279_v54, 0.0 }
 0x138   : > { %v283_v56 = vadd.f32 %v282_v55, %v281_v53 }
 0x13a   : > { %284 = vadd.xlane.f32.xlu0 %v283_v56 }
 0x1ad   : > { %v285_v57 = vpop.xlane.xlu0 %284 }
 0x1ae   : > { %v286_v58 = vrot.slane %v285_v57, 4 }
 0x1b0   : > { %v287_v59 = vadd.f32 %v286_v58, %v285_v57 }
 0x1b2   : > { %v288_v60 = vrot.slane %v287_v59, 2 }
 0x1b4   : > { %v289_v61 = vadd.f32 %v288_v60, %v287_v59 }
 0x1b6   : > { %v290_v62 = vrot.slane %v289_v61, 1 }
 0x1b8   : > { %v291_v63 = vadd.f32 %v290_v62, %v289_v61 }
 0x1ba   : > { %417 = vpush %v291_v63 }
 0x1eb   : > { %s418_s5 = spop %417 }
 0x1ec   : > { %v293_v0 = vstv %s418_s5 }
 0x1ed   : > { %294 = vst [vmem:[%s621_s3] sm:$0xff] %v293_v0 }
 0x1ee PF: > { %298 = sbr.rel (%p85_p2) target bundleno = 683 (0x2ab), region = 36 }
 0x1f3   : > { %vm299_vm6 = vcmask 7168  }
 0x1f4   : > { %v300_v1 = vsel %vm299_vm6, %v263_v41, 0.0  ;;  %v301_v2 = vsel %vm299_vm6, %v264_v46, 0.0 }
 0x1f5   : > { %v302_v3 = vadd.f32 %v301_v2, %v300_v1 }
 0x1f7   : > { %303 = vadd.xlane.f32.xlu0 %v302_v3 }
 0x26a   : > { %v304_v4 = vpop.xlane.xlu0 %303 }
 0x26b   : > { %v305_v5 = vrot.slane %v304_v4, 4 }
 0x26d   : > { %v306_v6 = vadd.f32 %v305_v5, %v304_v4 }
 0x26f   : > { %v307_v7 = vrot.slane %v306_v6, 2 }
 0x271   : > { %v308_v8 = vadd.f32 %v307_v7, %v306_v6 }
 0x273   : > { %v309_v9 = vrot.slane %v308_v8, 1 }
 0x275   : > { %v310_v10 = vadd.f32 %v309_v9, %v308_v8 }
 0x277   : > { %419 = vpush %v310_v10 }
 0x2a8   : > { %s420_s6 = spop %419 }
 0x2a9   : > { %v312_v11 = vstv %s420_s6 }
 0x2aa   : > { %313 = vst [vmem:[%s621_s3] sm:$0xff] %v312_v11 }
 0x2ab PF: > { %s414_s7 = sshll.u32 %s576_s13, 3  ;;  %s327_s17 = sshll.u32 %s621_s3, 4  ;;  %s328_s17 = int_to_ptr.vmem [resolvable:$true] %s327_s17 }
 0x2ac   : > { %s325_s16 = scalar_lea.hbm %s665_s2, %s414_s7  ;;  %s315_s22 = scalar_lea.sflag [#allocation3], %s175_s29 }
 0x2ad   : > { %s329_s21 = sshll.u32 %s325_s16, 4  ;;  %s495_s13 = scalar_lea.hbm %s665_s2, 24  ;;  %s330_s21 = int_to_ptr.hbm [resolvable:$true] %s329_s21 }
 0x2ae   : > { %s489_s23 = sshra.s32 %s330_s21, 4  ;;  %s490_s23 = int_to_ptr.hbm [resolvable:$true] %s489_s23 }
 0x2af   : > { %s491_s24 = scalar_lea.hbm %s490_s23, 8  ;;  %p496_p1 = scmp.lt.s32.totalorder %s490_s23, %s665_s2 }
 0x2b0   : > { %p492_p12 = scmp.ne.s32.totalorder %s490_s23, %s491_s24  ;;  %p497_p2 = scmp.lt.s32.totalorder %s495_s13, %s491_s24 }
 0x2b2   : > { %p493_p13 = pnand %p492_p12, %p595_p5  ;;  %p498_p3 = por %p497_p2, %p496_p1 }
 0x2b4   : > { %p494_p0 = pneg %p493_p13 }
 0x2b6   : > { %p499_p4 = pnand %p498_p3, %p494_p0 }
 0x2b8   : > { %502 = shalt.err (!%p499_p4)
}
 0x2b9   : > { %421 = dma.vmem_to_hbm [thread:$0]  (%p595_p5), %s328_s17, 128, %s330_s21, %s315_s22  }
 0x2ba PF: > { %p427_p7 = scmp.ge.s32.totalorder %s537_s12, 2  ;;  %s341_s29 = sand.u32 1, %s525_s9  }
 0x2bb   : > { %s342_s30 = scalar_lea.sflag [#allocation3], %s341_s29 }
 0x2bc   : > { %p424_p8 = pnand %p427_p7, %p599_p6 }
 0x2be   : > { %p425_p9 = pneg %p424_p8 }
 0x2c0   : > { %520 = dma.done.wait (%p425_p9), %s342_s30, 128  }
 0x2c1   : > { %522 = vsyncadd (%p425_p9), %s342_s30, 4294967168  ;;  %p12_p10 = scmp.ge.s32.totalorder %s580_s15, 5   ;;  %s668_s9 = smov %s529_s10 }
 0x2c2   : > { %s669_s10 = smov %s533_s11  ;;  %s670_s11 = smov %s591_s18 }
 0x2c3   : > { %s671_s12 = smov %s580_s15  ;;  %14 = sbr.rel (!%p12_p10) target bundleno = 3 (0x3), region = 74 }
 0x2c8   :  { %348 = vsyncpa [#allocation3], 1 }
 0x2c9   :  { %350 = vsyncpa [#allocation3 + $0x1], 1 }

</bundles_post_ra>
